<compile_context>
chip_gen: v7x
topology: tpu7x:2x2x1
jax: 0.10.0
libtpu: 0.0.40
codegen_flags: <defaults>
</compile_context>

<pallas_src>
import functools

import numpy as np

import jax
import jax.numpy as jnp
from jax.experimental import pallas as pl
from jax.experimental.pallas import tpu as pltpu


# ---------------------------------------------------------------------------
# helpers
# ---------------------------------------------------------------------------

def _pick_tile(n, target, mult):
    """Largest t <= target with t % mult == 0 and n % t == 0; fall back to full n."""
    if n <= target:
        return n
    t = (target // mult) * mult
    while t >= mult:
        if n % t == 0:
            return t
        t -= mult
    return n


# ---------------------------------------------------------------------------
# Pallas kernel 1: fused 1x1-conv + BN(eval) + ReLU *stack* (all layers in one call)
#   x: (B, Cin, L) channel-major, tiled over (batch, spatial).
#   optional gate: (B, Cin, 1) channel-attention gate multiplied in before layer 0.
#   transpose_out=True  -> output (B, L, Cout)  (for q / v, consumed row-major by attention)
#   transpose_out=False -> output (B, Cout, L)  (channel-major, lane-dense)
# ---------------------------------------------------------------------------

def _proj_stack_kernel(*refs, n_layers, has_gate, transpose_out):
    idx = 0
    x = refs[idx][0]                                         # (Cin, Tl)
    idx += 1
    if has_gate:
        x = x * refs[idx][0]                                 # (Cin, 1) broadcast over lanes
        idx += 1
    for _ in range(n_layers):
        w = refs[idx][...]                                   # (Cout, Cin)
        s = refs[idx + 1][...]                               # (Cout, 1) folded-BN scale
        b = refs[idx + 2][...]                               # (Cout, 1) folded-BN shift
        idx += 3
        x = jnp.dot(w, x, preferred_element_type=jnp.float32)  # MXU
        x = jnp.maximum(x * s + b, 0.0)
    o_ref = refs[idx]
    y = x.T if transpose_out else x                          # one small XLU transpose per tile
    o_ref[0] = y.astype(o_ref.dtype)


def _run_proj_stack(x_cm, layers, *, gate=None, transpose_out=False, tl_target=512):
    """x_cm: (B, Cin, L) -> (B, Cout, L) or (B, L, Cout)."""
    B, Cin, L = x_cm.shape
    Cout = layers[-1]["w"].shape[0]
    Tl = _pick_tile(L, tl_target, 128)
    grid = (B, L // Tl)

    in_specs = [pl.BlockSpec((1, Cin, Tl), lambda b, l: (b, 0, l))]
    args = [x_cm]
    if gate is not None:
        in_specs.append(pl.BlockSpec((1, Cin, 1), lambda b, l: (b, 0, 0)))
        args.append(gate)
    for lyr in layers:
        co, ci = lyr["w"].shape
        in_specs += [
            pl.BlockSpec((co, ci), lambda b, l: (0, 0)),
            pl.BlockSpec((co, 1), lambda b, l: (0, 0)),
            pl.BlockSpec((co, 1), lambda b, l: (0, 0)),
        ]
        args += [lyr["w"], lyr["scale"].reshape(co, 1), lyr["shift"].reshape(co, 1)]

    if transpose_out:
        out_shape = jax.ShapeDtypeStruct((B, L, Cout), x_cm.dtype)
        out_spec = pl.BlockSpec((1, Tl, Cout), lambda b, l: (b, l, 0))
    else:
        out_shape = jax.ShapeDtypeStruct((B, Cout, L), x_cm.dtype)
        out_spec = pl.BlockSpec((1, Cout, Tl), lambda b, l: (b, 0, l))

    kernel = functools.partial(_proj_stack_kernel, n_layers=len(layers),
                               has_gate=gate is not None, transpose_out=transpose_out)
    return pl.pallas_call(
        kernel,
        out_shape=out_shape,
        grid_spec=pltpu.PrefetchScalarGridSpec(
            num_scalar_prefetch=0, grid=grid,
            in_specs=in_specs, out_specs=out_spec),
        compiler_params=pltpu.CompilerParams(
            dimension_semantics=("parallel", "parallel")),
    )(*args)


# ---------------------------------------------------------------------------
# Pallas kernel 2: fused key + value projection stacks in a single pallas_call.
#   key   -> (B, Ct, L)  channel-major (fed straight into q@k, no transpose)
#   value -> (B, L, Ct)  row-major (fed straight into p@v, no transpose)
# ---------------------------------------------------------------------------

def _kv_proj_kernel(*refs, nk, nv):
    n_in = 2 + 3 * (nk + nv)
    k_out_ref, v_out_ref = refs[n_in], refs[n_in + 1]

    idx = 2
    x = refs[0][0]                                           # key input (Ck, Tl)
    for _ in range(nk):
        w, s, b = refs[idx][...], refs[idx + 1][...], refs[idx + 2][...]
        idx += 3
        x = jnp.maximum(jnp.dot(w, x, preferred_element_type=jnp.float32) * s + b, 0.0)
    k_out_ref[0] = x.astype(k_out_ref.dtype)                 # stays channel-major, lane-dense

    x = refs[1][0]                                           # value input (Cv, Tl)
    for _ in range(nv):
        w, s, b = refs[idx][...], refs[idx + 1][...], refs[idx + 2][...]
        idx += 3
        x = jnp.maximum(jnp.dot(w, x, preferred_element_type=jnp.float32) * s + b, 0.0)
    v_out_ref[0] = x.T.astype(v_out_ref.dtype)               # (Tl, Ct) for the attention p@v


def _run_kv_proj(k_in, v_in, key_layers, value_layers, *, tl_target=512):
    B, Ck, L = k_in.shape
    _, Cv, Lv = v_in.shape
    assert Lv == L
    CkO = key_layers[-1]["w"].shape[0]
    CvO = value_layers[-1]["w"].shape[0]
    Tl = _pick_tile(L, tl_target, 128)
    grid = (B, L // Tl)

    in_specs = [pl.BlockSpec((1, Ck, Tl), lambda b, l: (b, 0, l)),
                pl.BlockSpec((1, Cv, Tl), lambda b, l: (b, 0, l))]
    args = [k_in, v_in]
    for lyr in list(key_layers) + list(value_layers):
        co, ci = lyr["w"].shape
        in_specs += [
            pl.BlockSpec((co, ci), lambda b, l: (0, 0)),
            pl.BlockSpec((co, 1), lambda b, l: (0, 0)),
            pl.BlockSpec((co, 1), lambda b, l: (0, 0)),
        ]
        args += [lyr["w"], lyr["scale"].reshape(co, 1), lyr["shift"].reshape(co, 1)]

    kernel = functools.partial(_kv_proj_kernel, nk=len(key_layers), nv=len(value_layers))
    return pl.pallas_call(
        kernel,
        out_shape=(jax.ShapeDtypeStruct((B, CkO, L), k_in.dtype),
                   jax.ShapeDtypeStruct((B, L, CvO), v_in.dtype)),
        grid_spec=pltpu.PrefetchScalarGridSpec(
            num_scalar_prefetch=0, grid=grid,
            in_specs=in_specs,
            out_specs=(pl.BlockSpec((1, CkO, Tl), lambda b, l: (b, 0, l)),
                       pl.BlockSpec((1, Tl, CvO), lambda b, l: (b, l, 0)))),
        compiler_params=pltpu.CompilerParams(
            dimension_semantics=("parallel", "parallel")),
    )(*args)


# ---------------------------------------------------------------------------
# Pallas kernel 3: fused attention  softmax(q @ k + bias) @ v
#   (the Ct^-0.5 scale is already folded into q; bias arrives pre-scaled in bf16)
#   flash-style online softmax over the KV grid axis (innermost, "arbitrary").
#   Output is written channel-major (B, Ct, L): one accumulator transpose at the
#   last KV step gives unmasked 128+-lane stores.
# ---------------------------------------------------------------------------

def _attn_kernel(q_ref, k_ref, v_ref, bias_ref, o_ref, m_sc, l_sc, acc_sc):
    ki = pl.program_id(2)

    @pl.when(ki == 0)
    def _():
        m_sc[...] = jnp.full_like(m_sc, -jnp.inf)
        l_sc[...] = jnp.zeros_like(l_sc)
        acc_sc[...] = jnp.zeros_like(acc_sc)

    q = q_ref[0]                                             # (Tq, Ct)
    k = k_ref[0]                                             # (Ct, Tk)  channel-major: native MXU
    s = jnp.dot(q, k, preferred_element_type=jnp.float32)    # (Tq, Tk) f32
    s = s + bias_ref[0].astype(jnp.float32)                  # bf16 bias stream -> f32

    m_prev = m_sc[...]
    m_new = jnp.maximum(m_prev, jnp.max(s, axis=-1, keepdims=True))
    alpha = jnp.exp(m_prev - m_new)                          # running-stat rescale
    p = jnp.exp(s - m_new)                                   # unnormalized probs
    l_sc[...] = alpha * l_sc[...] + jnp.sum(p, axis=-1, keepdims=True)
    acc_sc[...] = alpha * acc_sc[...] + jnp.dot(
        p.astype(v_ref.dtype), v_ref[0], preferred_element_type=jnp.float32)
    m_sc[...] = m_new

    @pl.when(ki == pl.num_programs(2) - 1)
    def _():
        # normalize AFTER the matmul (Tq*Ct mults, not Tq*Tk), approx recip on the EUP;
        # transpose once so the store is channel-major and lane-dense (Tq lanes).
        out = acc_sc[...] * pl.reciprocal(l_sc[...], approx=True)
        o_ref[0] = out.T.astype(o_ref.dtype)


def flash_attention_with_bias(q, k_cm, v, bias, *, tq=None, tk=None):
    """q: (B, L, Ct) pre-scaled, k_cm: (B, Ct, L), v: (B, L, Ct), bias: (B, L, L) bf16.

    Returns channel-major context (B, Ct, L)."""
    B, L, Ct = q.shape
    Tq = tq if tq is not None else _pick_tile(L, 256, 128)
    Tk = tk if tk is not None else _pick_tile(L, 1024, 128)
    # TODO(synk): for L % 128 != 0 the fallback uses a full-L block; pad L (with -inf bias)
    # to a multiple of 128 instead to keep VMEM bounded on v7x (64 MiB).
    grid = (B, L // Tq, L // Tk)                             # parallel extent B*(L//Tq) >= 2
    return pl.pallas_call(
        _attn_kernel,
        out_shape=jax.ShapeDtypeStruct((B, Ct, L), q.dtype),
        grid_spec=pltpu.PrefetchScalarGridSpec(
            num_scalar_prefetch=0,
            grid=grid,
            in_specs=[
                pl.BlockSpec((1, Tq, Ct), lambda b, qi, ki: (b, qi, 0)),
                pl.BlockSpec((1, Ct, Tk), lambda b, qi, ki: (b, 0, ki)),
                pl.BlockSpec((1, Tk, Ct), lambda b, qi, ki: (b, ki, 0)),
                pl.BlockSpec((1, Tq, Tk), lambda b, qi, ki: (b, qi, ki)),
            ],
            out_specs=pl.BlockSpec((1, Ct, Tq), lambda b, qi, ki: (b, 0, qi)),
            scratch_shapes=[
                pltpu.VMEM((Tq, 1), jnp.float32),   # running max
                pltpu.VMEM((Tq, 1), jnp.float32),   # running denom
                pltpu.VMEM((Tq, Ct), jnp.float32),  # accumulator
            ],
        ),
        compiler_params=pltpu.CompilerParams(
            dimension_semantics=("parallel", "parallel", "arbitrary")),
    )(q, k_cm, v, bias)


# ---------------------------------------------------------------------------
# Plain-JAX glue: channel attention + RPE bias gather
# ---------------------------------------------------------------------------

def _channel_attention(p, x):
    # TODO(synk): per-image 2x(C -> C/16 -> C) matvec on pooled scalars — too small for a
    # Pallas kernel; the resulting gate multiply IS fused into the query-projection kernel.
    avg = jnp.mean(x, axis=(2, 3))                           # (B, C)
    mx = jnp.max(x, axis=(2, 3))                             # (B, C)

    def fc(z):
        h = jnp.maximum(z @ p["w1"].T, 0.0)
        return h @ p["w2"].T

    return jax.nn.sigmoid(fc(avg) + fc(mx))                  # (B, C)


def _rpe_bias(q_blc, rpe_weight, rel_idx):
    # TODO(synk): data-dependent per-row bucket gather; left to XLA's gather. The O(B*L^2)
    # result is streamed to the attention kernel in bfloat16 to halve its HBM traffic.
    B, L, _ = q_blc.shape
    lut = jnp.einsum("blc,cn->bln", q_blc, rpe_weight)       # (B, L, num_buckets)
    idx = jnp.broadcast_to(rel_idx[None], (B, L, L))
    return jnp.take_along_axis(lut, idx, axis=2)             # (B, L, L)


# ---------------------------------------------------------------------------
# Full SelfAttentionBlock forward (Pallas path)
# ---------------------------------------------------------------------------

def self_attention_block(params, query_feats, key_feats, value_feats, *,
                         attn_tq=None, attn_tk=None):
    B, Cq, H, W = query_feats.shape
    Ct = params["transform_channels"]
    L = H * W
    attn_scale = float(Ct) ** -0.5

    # 1. channel-attention gate (tiny; multiply fused into the query projection below)
    gate = _channel_attention(params["channel_attention"], query_feats).reshape(B, Cq, 1)

    q_in = query_feats.reshape(B, Cq, L)
    k_in = key_feats.reshape(B, key_feats.shape[1], L)
    v_in = value_feats.reshape(B, value_feats.shape[1], L)

    # fold the softmax scale into the last query-projection layer (ReLU commutes with
    # a positive scalar); the RPE lut is built from the scaled q so the bias is scaled too.
    q_layers = [dict(lyr) for lyr in params["query_project"]]
    q_layers[-1]["scale"] = q_layers[-1]["scale"] * attn_scale
    q_layers[-1]["shift"] = q_layers[-1]["shift"] * attn_scale

    # 2. projections (3 fused Pallas calls): q -> (B, L, Ct) pre-scaled,
    #    k -> (B, Ct, L) channel-major, v -> (B, L, Ct). No wrapper transposes.
    q = _run_proj_stack(q_in, q_layers, gate=gate, transpose_out=True)
    k_cm, v = _run_kv_proj(k_in, v_in, params["key_project"], params["value_project"])

    # 3. relative-position bias (already scaled via q), streamed in bf16
    bias = _rpe_bias(q, params["rpe_weight"], params["rpe_index"]).astype(jnp.bfloat16)

    # 4. fused flash attention -> channel-major context (B, Ct, L)
    ctx_cm = flash_attention_with_bias(q, k_cm, v, bias, tq=attn_tq, tk=attn_tk)

    # 5. output projection (Pallas), channel-major in/out
    out = _run_proj_stack(ctx_cm, params["out_project"])
    return out.reshape(B, -1, H, W)


# ---------------------------------------------------------------------------
# Pure-JAX reference (mirrors the PyTorch forward with eval-mode BN folded)
# ---------------------------------------------------------------------------

def _reference(params, query_feats, key_feats, value_feats):
    B, _, H, W = query_feats.shape
    Ct = params["transform_channels"]
    scale = float(Ct) ** -0.5

    gate = _channel_attention(params["channel_attention"], query_feats)
    qf = gate[:, :, None, None] * query_feats

    def proj(x, layers):
        y = x.reshape(x.shape[0], x.shape[1], -1)            # (B, C, L)
        for lyr in layers:
            y = jnp.einsum("oc,bcl->bol", lyr["w"], y)
            y = y * lyr["scale"][None, :, None] + lyr["shift"][None, :, None]
            y = jnp.maximum(y, 0.0)
        return y

    q = jnp.transpose(proj(qf, params["query_project"]), (0, 2, 1))      # (B, L, Ct)
    k = proj(key_feats, params["key_project"])                           # (B, Ct, L)
    v = jnp.transpose(proj(value_feats, params["value_project"]), (0, 2, 1))

    sim = jnp.einsum("blc,bcm->blm", q, k) * scale
    pos = _rpe_bias(q, params["rpe_weight"], params["rpe_index"]) * scale
    attn = jax.nn.softmax(sim + pos, axis=-1)
    ctx = jnp.einsum("blm,bmc->blc", attn, v)                            # (B, L, Ct)
    ctx = jnp.transpose(ctx, (0, 2, 1)).reshape(B, Ct, H, W)
    out = proj(ctx, params["out_project"])
    return out.reshape(B, -1, H, W)


# ---------------------------------------------------------------------------
# Parameter construction
# ---------------------------------------------------------------------------

def _rpe_relative_index(fh, fw):
    ch, cw = np.meshgrid(np.arange(fh), np.arange(fw), indexing="ij")
    coords = np.stack([ch, cw]).reshape(2, -1)               # (2, L)
    rel = coords[:, :, None] - coords[:, None, :]            # (2, L, L)
    rel = rel.transpose(1, 2, 0).astype(np.int64)            # (L, L, 2)
    rel[:, :, 0] += fh - 1
    rel[:, :, 1] += fw - 1
    rel[:, :, 0] *= 2 * fw - 1
    return jnp.asarray(rel.sum(-1).astype(np.int32))         # (L, L)


def _make_conv_bn_layer(key, cin, cout):
    kw, kg, kb, km, kv = jax.random.split(key, 5)
    w = (jax.random.normal(kw, (cout, cin)) / np.sqrt(cin)).astype(jnp.float32)
    gamma = 1.0 + 0.1 * jax.random.normal(kg, (cout,))
    beta = 0.1 * jax.random.normal(kb, (cout,))
    mean = 0.1 * jax.random.normal(km, (cout,))
    var = 1.0 + 0.1 * jax.random.uniform(kv, (cout,))
    scale = (gamma / jnp.sqrt(var + 1e-5)).astype(jnp.float32)
    shift = (beta - mean * scale).astype(jnp.float32)
    return {"w": w, "scale": scale, "shift": shift}


def _make_project(key, cin, cout, num_convs):
    keys = jax.random.split(key, num_convs)
    layers = [_make_conv_bn_layer(keys[0], cin, cout)]
    for i in range(1, num_convs):
        layers.append(_make_conv_bn_layer(keys[i], cout, cout))
    return layers


def init_params(key, *, key_in_channels, query_in_channels, transform_channels,
                out_channels, key_query_num_convs, value_out_num_convs, feature_size):
    fh, fw = feature_size
    num_buckets = (2 * fh - 1) * (2 * fw - 1)
    k_ca1, k_ca2, k_qp, k_kp, k_vp, k_op, k_rpe = jax.random.split(key, 7)
    hidden = query_in_channels // 16
    return {
        "transform_channels": transform_channels,
        "channel_attention": {
            "w1": (0.1 * jax.random.normal(k_ca1, (hidden, query_in_channels))).astype(jnp.float32),
            "w2": (0.1 * jax.random.normal(k_ca2, (query_in_channels, hidden))).astype(jnp.float32),
        },
        "query_project": _make_project(k_qp, query_in_channels, transform_channels,
                                       key_query_num_convs),
        "key_project": _make_project(k_kp, key_in_channels, transform_channels,
                                     key_query_num_convs),
        "value_project": _make_project(k_vp, key_in_channels, transform_channels,
                                       value_out_num_convs),
        "out_project": _make_project(k_op, transform_channels, out_channels,
                                     value_out_num_convs),
        "rpe_weight": (0.02 * jax.random.normal(k_rpe, (transform_channels, num_buckets))
                       ).astype(jnp.float32),
        "rpe_index": _rpe_relative_index(fh, fw),
    }


# ---------------------------------------------------------------------------
# main
# ---------------------------------------------------------------------------

if __name__ == "__main__":
    key = jax.random.PRNGKey(0)
    k_params, k_q, k_k, k_v = jax.random.split(key, 4)

    B = 2
    query_in_channels = 32
    key_in_channels = 24
    transform_channels = 32
    out_channels = 32
    H, W = 16, 16          # L = 256

    params = init_params(
        k_params,
        key_in_channels=key_in_channels,
        query_in_channels=query_in_channels,
        transform_channels=transform_channels,
        out_channels=out_channels,
        key_query_num_convs=2,
        value_out_num_convs=1,
        feature_size=(H, W),
    )

    query_feats = jax.random.normal(k_q, (B, query_in_channels, H, W), dtype=jnp.float32)
    key_feats = jax.random.normal(k_k, (B, key_in_channels, H, W), dtype=jnp.float32)
    value_feats = jax.random.normal(k_v, (B, key_in_channels, H, W), dtype=jnp.float32)

    # Use 128x128 attention tiles at L=256 so the multi-step online-softmax path
    # (grid = (B, 2, 2)) is actually exercised; production defaults are Tq=256 / Tk=1024.
    out = self_attention_block(params, query_feats, key_feats, value_feats,
                               attn_tq=128, attn_tk=128)
    out = jax.block_until_ready(out)

    ref = _reference(params, query_feats, key_feats, value_feats)
    assert out.shape == (B, out_channels, H, W), out.shape
    assert jnp.allclose(out, ref, atol=3e-3, rtol=3e-3), "mismatch vs reference"

    print("KERNEL_OK")
</pallas_src>

<mosaic_0001>
module attributes {stable_mosaic.version = 11 : i64} {
  func.func @_proj_stack_kernel(%arg0: i32, %arg1: i32, %arg2: memref<1x32x256xf32, #tpu.memory_space<vmem>>, %arg3: memref<1x32x1xf32, #tpu.memory_space<vmem>>, %arg4: memref<32x32xf32, #tpu.memory_space<vmem>>, %arg5: memref<32x1xf32, #tpu.memory_space<vmem>>, %arg6: memref<32x1xf32, #tpu.memory_space<vmem>>, %arg7: memref<32x32xf32, #tpu.memory_space<vmem>>, %arg8: memref<32x1xf32, #tpu.memory_space<vmem>>, %arg9: memref<32x1xf32, #tpu.memory_space<vmem>>, %arg10: memref<1x256x32xf32, #tpu.memory_space<vmem>>) attributes {dimension_semantics = [#tpu.dimension_semantics<parallel>, #tpu.dimension_semantics<parallel>], iteration_bounds = array<i64: 2, 1>, scalar_prefetch = 0 : i64, scratch_operands = 0 : i64, tpu.core_type = #tpu.core_type<tc>, window_params = [{transform_indices = @transform_0, window_bounds = array<i64: 1, 32, 256>}, {transform_indices = @transform_1, window_bounds = array<i64: 1, 32, 1>}, {pipeline_mode = #tpu.pipeline_mode<synchronous>, transform_indices = @transform_2, window_bounds = array<i64: 32, 32>}, {pipeline_mode = #tpu.pipeline_mode<synchronous>, transform_indices = @transform_3, window_bounds = array<i64: 32, 1>}, {pipeline_mode = #tpu.pipeline_mode<synchronous>, transform_indices = @transform_4, window_bounds = array<i64: 32, 1>}, {pipeline_mode = #tpu.pipeline_mode<synchronous>, transform_indices = @transform_5, window_bounds = array<i64: 32, 32>}, {pipeline_mode = #tpu.pipeline_mode<synchronous>, transform_indices = @transform_6, window_bounds = array<i64: 32, 1>}, {pipeline_mode = #tpu.pipeline_mode<synchronous>, transform_indices = @transform_7, window_bounds = array<i64: 32, 1>}, {transform_indices = @transform_8, window_bounds = array<i64: 1, 256, 32>}]} {
    %c0 = arith.constant 0 : index
    %c0_0 = arith.constant 0 : index
    %c0_1 = arith.constant 0 : index
    %0 = vector.load %arg2[%c0, %c0_0, %c0_1] : memref<1x32x256xf32, #tpu.memory_space<vmem>>, vector<1x32x256xf32>
    %1 = vector.shape_cast %0 : vector<1x32x256xf32> to vector<32x256xf32>
    %c0_2 = arith.constant 0 : index
    %c0_3 = arith.constant 0 : index
    %c0_4 = arith.constant 0 : index
    %2 = vector.load %arg3[%c0_2, %c0_3, %c0_4] : memref<1x32x1xf32, #tpu.memory_space<vmem>>, vector<1x32x1xf32>
    %3 = vector.shape_cast %2 : vector<1x32x1xf32> to vector<32x1xf32>
    %4 = vector.broadcast %3 : vector<32x1xf32> to vector<32x256xf32>
    %5 = arith.mulf %1, %4 : vector<32x256xf32>
    %c0_5 = arith.constant 0 : index
    %c0_6 = arith.constant 0 : index
    %6 = vector.load %arg4[%c0_5, %c0_6] : memref<32x32xf32, #tpu.memory_space<vmem>>, vector<32x32xf32>
    %c0_7 = arith.constant 0 : index
    %c0_8 = arith.constant 0 : index
    %7 = vector.load %arg5[%c0_7, %c0_8] : memref<32x1xf32, #tpu.memory_space<vmem>>, vector<32x1xf32>
    %c0_9 = arith.constant 0 : index
    %c0_10 = arith.constant 0 : index
    %8 = vector.load %arg6[%c0_9, %c0_10] : memref<32x1xf32, #tpu.memory_space<vmem>>, vector<32x1xf32>
    %cst = arith.constant dense<0.000000e+00> : vector<32x256xf32>
    %9 = tpu.matmul %6, %5, %cst {dimension_numbers = #tpu.dot_dimension_numbers<[1], [0], [0], [1], [0, 0, 1, 1], [], []>} : vector<32x32xf32>, vector<32x256xf32>, vector<32x256xf32> -> vector<32x256xf32>
    %10 = vector.broadcast %7 : vector<32x1xf32> to vector<32x256xf32>
    %11 = arith.mulf %9, %10 : vector<32x256xf32>
    %12 = vector.broadcast %8 : vector<32x1xf32> to vector<32x256xf32>
    %13 = arith.addf %11, %12 : vector<32x256xf32>
    %cst_11 = arith.constant 0.000000e+00 : f32
    %14 = vector.broadcast %cst_11 : f32 to vector<32x256xf32>
    %15 = arith.maximumf %13, %14 : vector<32x256xf32>
    %c0_12 = arith.constant 0 : index
    %c0_13 = arith.constant 0 : index
    %16 = vector.load %arg7[%c0_12, %c0_13] : memref<32x32xf32, #tpu.memory_space<vmem>>, vector<32x32xf32>
    %c0_14 = arith.constant 0 : index
    %c0_15 = arith.constant 0 : index
    %17 = vector.load %arg8[%c0_14, %c0_15] : memref<32x1xf32, #tpu.memory_space<vmem>>, vector<32x1xf32>
    %c0_16 = arith.constant 0 : index
    %c0_17 = arith.constant 0 : index
    %18 = vector.load %arg9[%c0_16, %c0_17] : memref<32x1xf32, #tpu.memory_space<vmem>>, vector<32x1xf32>
    %cst_18 = arith.constant dense<0.000000e+00> : vector<32x256xf32>
    %19 = tpu.matmul %16, %15, %cst_18 {dimension_numbers = #tpu.dot_dimension_numbers<[1], [0], [0], [1], [0, 0, 1, 1], [], []>} : vector<32x32xf32>, vector<32x256xf32>, vector<32x256xf32> -> vector<32x256xf32>
    %20 = vector.broadcast %17 : vector<32x1xf32> to vector<32x256xf32>
    %21 = arith.mulf %19, %20 : vector<32x256xf32>
    %22 = vector.broadcast %18 : vector<32x1xf32> to vector<32x256xf32>
    %23 = arith.addf %21, %22 : vector<32x256xf32>
    %cst_19 = arith.constant 0.000000e+00 : f32
    %24 = vector.broadcast %cst_19 : f32 to vector<32x256xf32>
    %25 = arith.maximumf %23, %24 : vector<32x256xf32>
    %26 = tpu.transpose %25, [1, 0] : vector<32x256xf32> -> vector<256x32xf32>
    %c0_20 = arith.constant 0 : index
    %c0_21 = arith.constant 0 : index
    %c0_22 = arith.constant 0 : index
    %27 = vector.load %arg10[%c0_20, %c0_21, %c0_22] : memref<1x256x32xf32, #tpu.memory_space<vmem>>, vector<1x256x32xf32>
    %28 = vector.shape_cast %27 : vector<1x256x32xf32> to vector<256x32xf32>
    %29 = vector.shape_cast %26 : vector<256x32xf32> to vector<1x256x32xf32>
    tpu.vector_store %arg10[%c0_20, %c0_21, %c0_22], %29 {strides = array<i32>} : memref<1x256x32xf32, #tpu.memory_space<vmem>>, vector<1x256x32xf32>,
    return
  }
  func.func @transform_0(%arg0: i32, %arg1: i32) -> (i32, i32, i32) {
    %c0_i32 = arith.constant 0 : i32
    %c0_i32_0 = arith.constant 0 : i32
    return %arg0, %c0_i32, %arg1 : i32, i32, i32
  }
  func.func @transform_1(%arg0: i32, %arg1: i32) -> (i32, i32, i32) {
    %c0_i32 = arith.constant 0 : i32
    %c0_i32_0 = arith.constant 0 : i32
    %c0_i32_1 = arith.constant 0 : i32
    return %arg0, %c0_i32, %c0_i32_0 : i32, i32, i32
  }
  func.func @transform_2(%arg0: i32, %arg1: i32) -> (i32, i32) {
    %c0_i32 = arith.constant 0 : i32
    %c0_i32_0 = arith.constant 0 : i32
    %c0_i32_1 = arith.constant 0 : i32
    return %c0_i32, %c0_i32_0 : i32, i32
  }
  func.func @transform_3(%arg0: i32, %arg1: i32) -> (i32, i32) {
    %c0_i32 = arith.constant 0 : i32
    %c0_i32_0 = arith.constant 0 : i32
    %c0_i32_1 = arith.constant 0 : i32
    return %c0_i32, %c0_i32_0 : i32, i32
  }
  func.func @transform_4(%arg0: i32, %arg1: i32) -> (i32, i32) {
    %c0_i32 = arith.constant 0 : i32
    %c0_i32_0 = arith.constant 0 : i32
    %c0_i32_1 = arith.constant 0 : i32
    return %c0_i32, %c0_i32_0 : i32, i32
  }
  func.func @transform_5(%arg0: i32, %arg1: i32) -> (i32, i32) {
    %c0_i32 = arith.constant 0 : i32
    %c0_i32_0 = arith.constant 0 : i32
    %c0_i32_1 = arith.constant 0 : i32
    return %c0_i32, %c0_i32_0 : i32, i32
  }
  func.func @transform_6(%arg0: i32, %arg1: i32) -> (i32, i32) {
    %c0_i32 = arith.constant 0 : i32
    %c0_i32_0 = arith.constant 0 : i32
    %c0_i32_1 = arith.constant 0 : i32
    return %c0_i32, %c0_i32_0 : i32, i32
  }
  func.func @transform_7(%arg0: i32, %arg1: i32) -> (i32, i32) {
    %c0_i32 = arith.constant 0 : i32
    %c0_i32_0 = arith.constant 0 : i32
    %c0_i32_1 = arith.constant 0 : i32
    return %c0_i32, %c0_i32_0 : i32, i32
  }
  func.func @transform_8(%arg0: i32, %arg1: i32) -> (i32, i32, i32) {
    %c0_i32 = arith.constant 0 : i32
    %c0_i32_0 = arith.constant 0 : i32
    return %arg0, %arg1, %c0_i32 : i32, i32, i32
  }
}

</mosaic_0001>

<bundles_post_ra>
// kernel: tpu_custom_call.1
= control target key start
LH: loop header
LB: loop body
LE: loop exit
PB: predicated region body
PF: predicated region fallthrough
CT: control target
= control target key end

     0   :  { %s1094_s27 = smov 0   ;;  %s1096_s28 = smov 0   ;;  %s1289_s0 = inlined_call_operand.vmem [shape: f32[2,32,256], index: 0, kind: input, shape index: {}]   ;;  %s1290_s1 = inlined_call_operand.vmem [shape: f32[2,32,1], index: 1, kind: input, shape index: {}]   ;;  %s1291_s2 = inlined_call_operand.vmem [shape: f32[32,32], index: 2, kind: input, shape index: {}]   ;;  %s1292_s3 = inlined_call_operand.vmem [shape: f32[32,1], index: 3, kind: input, shape index: {}]   ;;  %s1293_s4 = inlined_call_operand.vmem [shape: f32[32,1], index: 4, kind: input, shape index: {}]   ;;  %s1294_s5 = inlined_call_operand.vmem [shape: f32[32,32], index: 5, kind: input, shape index: {}]   ;;  %s1295_s6 = inlined_call_operand.vmem [shape: f32[32,1], index: 6, kind: input, shape index: {}]   ;;  %s1296_s7 = inlined_call_operand.vmem [shape: f32[32,1], index: 7, kind: input, shape index: {}]   ;;  %s1297_s8 = inlined_call_operand.vmem [shape: f32[2,256,32], index: 8, kind: output, shape index: {}]  }
   0x1   :  { %s1098_s29 = smov 0  }
   0x2 LB: > { %s30_s30 = sadd.s32 1, %s1041_s28  ;;  %p959_p0 = scmp.ge.s32.totalorder %s1045_s29, 1  ;;  %s1045_s29 = sphi %s1098_s29, %s18_s29   ;;  %s1041_s28 = sphi %s1096_s28, %s1299_s28   ;;  %s1037_s27 = sphi %s1094_s27, %s1298_s27  }
   0x3   : > { %p32_p1 = scmp.ge.s32.totalorder %s30_s30, 2  ;;  %p293_p2 = scmp.lt.s32.totalorder %s1045_s29, 3 }
   0x5   : > { %s1301_s30 = smov (%p32_p1, %s30_s30), 0  ;;  %p294_p3 = pnand %p959_p0, %p293_p2 }
   0x6   : > { %p341_p4 = scmp.lt.s32.totalorder (!%p294_p3), %s1037_s27, 1  ;;  %v1047_v0 = vmov (!%p294_p3), 0   ;;  %v410_v5 = vld [vmem:[%s1292_s3 + $0x8] sm:$0xff] (!%p294_p3)  ;;  %v409_v6 = vld [vmem:[%s1292_s3] sm:$0xff] (!%p294_p3)  ;;  %v412_v9 = vld [vmem:[%s1292_s3 + $0x18] sm:$0xff] (!%p294_p3)  ;;  %v1048_v11 = vmov (!%p294_p3), 0.0  }
   0x7   : > { %297 = sbr.rel (%p294_p3) target bundleno = 808 (0x328), region = 52  ;;  %1022 = vset.pattern.permute.xlu1 (!%p294_p3), %v1047_v0  ;;  %1021 = vset.pattern.permute.xlu0 (!%p294_p3), %v1047_v0  ;;  %v414_v7 = vld [vmem:[%s1293_s4 + $0x8] sm:$0xff] (!%p294_p3)  ;;  %v413_v8 = vld [vmem:[%s1293_s4] sm:$0xff] (!%p294_p3)  ;;  %v411_v10 = vld [vmem:[%s1292_s3 + $0x10] sm:$0xff] (!%p294_p3)  ;;  %vm417_vm0 = vcmask (!%p294_p3), 261120  }
   0x8   : > { %494 = vmatprep.mubr.f32.mxu0 (!%p294_p3), %v1048_v11  ;;  %671 = vmatprep.mubr.f32.mxu1 (!%p294_p3), %v1048_v11  ;;  %v416_v12 = vld [vmem:[%s1293_s4 + $0x18] sm:$0xff] (!%p294_p3)  ;;  %v415_v13 = vld [vmem:[%s1293_s4 + $0x10] sm:$0xff] (!%p294_p3)  ;;  %v588_v14 = vld [vmem:[%s1295_s6 + $0x8] sm:$0xff] (!%p294_p3) }
   0x9   : > { %v587_v15 = vld [vmem:[%s1295_s6] sm:$0xff] (!%p294_p3)  ;;  %v589_v16 = vld [vmem:[%s1295_s6 + $0x10] sm:$0xff] (!%p294_p3)  ;;  %v590_v18 = vld [vmem:[%s1295_s6 + $0x18] sm:$0xff] (!%p294_p3) }
   0xa   : > { %v591_v17 = vld [vmem:[%s1296_s7] sm:$0xff] (!%p294_p3)  ;;  %v592_v19 = vld [vmem:[%s1296_s7 + $0x8] sm:$0xff] (!%p294_p3)  ;;  %v594_v20 = vld [vmem:[%s1296_s7 + $0x18] sm:$0xff] (!%p294_p3) }
   0xb   : > { %v593_v21 = vld [vmem:[%s1296_s7 + $0x10] sm:$0xff] (!%p294_p3)  ;;  %v405_v46 = vld [vmem:[%s1291_s2] sm:$0xff] (!%p294_p3)  ;;  %v406_v47 = vld [vmem:[%s1291_s2 + $0x8] sm:$0xff] (!%p294_p3) }
   0xc   : > { %v407_v48 = vld [vmem:[%s1291_s2 + $0x10] sm:$0xff] (!%p294_p3)  ;;  %v408_v49 = vld [vmem:[%s1291_s2 + $0x18] sm:$0xff] (!%p294_p3) }
   0xe   : > { %s1303_s27 = smov (!%p341_p4, %s1037_s27), 1 }
   0xf   : > { %s977_s9 = sshll.u32 %s1303_s27, 5  ;;  %s978_s11 = sshll.u32 %s1303_s27, 8 }
  0x10   : > { %s354_s12 = scalar_lea.vmem %s1290_s1, %s977_s9  ;;  %s976_s9 = sshll.u32 %s1303_s27, 6 }
  0x11   : > { %v375_v1 = vld [vmem:[%s354_s12 + $0x10] sm:$0xff]  ;;  %v373_v2 = vld [vmem:[%s354_s12] sm:$0xff]  ;;  %v376_v3 = vld [vmem:[%s354_s12 + $0x18] sm:$0xff]  ;;  %s1214_s14 = scalar_lea.vmem %s1297_s8, %s978_s11 }
  0x12   : > { %389 = vperm.xlu1 %1022, %v375_v1   ;;  %379 = vperm.xlu0 %1021, %v373_v2   ;;  %v374_v4 = vld [vmem:[%s354_s12 + $0x8] sm:$0xff]  ;;  %s348_s12 = scalar_lea.vmem %s1289_s0, %s976_s9 }
  0x13   : > { %v370_v24 = vld [vmem:[%s348_s12 + $0x28] sm:$0xff]  ;;  %v365_v25 = vld [vmem:[%s348_s12] sm:$0xff]  ;;  %v372_v27 = vld [vmem:[%s348_s12 + $0x38] sm:$0xff] }
  0x14   : > { %v366_v26 = vld [vmem:[%s348_s12 + $0x8] sm:$0xff]  ;;  %v367_v28 = vld [vmem:[%s348_s12 + $0x10] sm:$0xff]  ;;  %v368_v29 = vld [vmem:[%s348_s12 + $0x18] sm:$0xff] }
  0x15   : > { %v369_v34 = vld [vmem:[%s348_s12 + $0x20] sm:$0xff]  ;;  %v371_v36 = vld [vmem:[%s348_s12 + $0x30] sm:$0xff] }
  0x16   : > { %394 = vperm.xlu1 %1022, %v376_v3   ;;  %384 = vperm.xlu0 %1021, %v374_v4  }
  0x1a   : > { %526 = vperm.xlu1 %1022, %v410_v5   ;;  %521 = vperm.xlu0 %1021, %v409_v6  }
  0x1e   : > { %554 = vperm.xlu1 %1022, %v414_v7   ;;  %549 = vperm.xlu0 %1021, %v413_v8  }
  0x22   : > { %536 = vperm.xlu1 %1022, %v412_v9   ;;  %531 = vperm.xlu0 %1021, %v411_v10  }
  0x26   : > { %564 = vperm.xlu1 %1022, %v416_v12   ;;  %559 = vperm.xlu0 %1021, %v415_v13  }
  0x2a   : > { %703 = vperm.xlu1 %1022, %v588_v14   ;;  %698 = vperm.xlu0 %1021, %v587_v15  }
  0x2e   : > { %708 = vperm.xlu1 %1022, %v589_v16   ;;  %726 = vperm.xlu0 %1021, %v591_v17  }
  0x32   : > { %713 = vperm.xlu1 %1022, %v590_v18   ;;  %731 = vperm.xlu0 %1021, %v592_v19  }
  0x36   : > { %741 = vperm.xlu1 %1022, %v594_v20   ;;  %736 = vperm.xlu0 %1021, %v593_v21  }
  0x91   : > { %v390_v22 = vpop.permute.xlu1 %389  ;;  %v380_v23 = vpop.permute.xlu0 %379 }
  0x92   : > { %v402_v30 = vmul.f32 %v390_v22, %v370_v24  ;;  %v397_v31 = vmul.f32 %v380_v23, %v365_v25  ;;  %v398_v35 = vmul.f32 %v380_v23, %v366_v26  ;;  %v401_v42 = vmul.f32 %v390_v22, %v369_v34  ;;  %v586_v34 = vld [vmem:[%s1294_s5 + $0x18] sm:$0xff] }
  0x95   : > { %v395_v32 = vpop.permute.xlu1 %394  ;;  %v385_v33 = vpop.permute.xlu0 %384 }
  0x96   : > { %v404_v37 = vmul.f32 %v395_v32, %v372_v27  ;;  %v399_v38 = vmul.f32 %v385_v33, %v367_v28  ;;  %v400_v39 = vmul.f32 %v385_v33, %v368_v29  ;;  %v403_v43 = vmul.f32 %v395_v32, %v371_v36  ;;  %v584_v32 = vld [vmem:[%s1294_s5 + $0x8] sm:$0xff]  ;;  %v585_v33 = vld [vmem:[%s1294_s5 + $0x10] sm:$0xff] }
  0x98   : > { %v979_v40 = vpack.c.bf16 %v400_v39, %v398_v35  ;;  %v981_v41 = vpack.c.bf16 %v399_v38, %v397_v31  ;;  %v983_v44 = vpack.c.bf16 %v404_v37, %v402_v30  ;;  %v985_v45 = vpack.c.bf16 %v403_v43, %v401_v42  ;;  %v583_v31 = vld [vmem:[%s1294_s5] sm:$0xff] }
  0x99   : > { %v522_v50 = vpop.permute.xlu0 %521  ;;  %v527_v51 = vpop.permute.xlu1 %526 }
  0x9a   : > { %980 = vmatprep.subr.bf16.mxu0 %v979_v40 }
  0x9b   : > { %982 = vmatpush1.bf16.msra.mxu0 %v981_v41 }
  0x9c   : > { %984 = vmatprep.subr.bf16.mxu0 %v983_v44 }
  0x9d   : > { %v550_v52 = vpop.permute.xlu0 %549  ;;  %v555_v56 = vpop.permute.xlu1 %554 }
  0x9f   : > { %986 = vmatpush1.bf16.msra.mxu0 %v985_v45 }
  0xa1   : > { %v532_v62 = vpop.permute.xlu0 %531  ;;  %v537_v2 = vpop.permute.xlu1 %536 }
  0xa2   : > { %966 = vmatmul.mubr.msk.f32.vlgmr.msra.gmra.mrb[0].mxu0 %vm417_vm0, %v405_v46 }
  0xa3   : > { %500 = vmatprep.mubr.f32.mxu0 %v1048_v11 }
  0xa5   : > { %v560_v14 = vpop.permute.xlu0 %559  ;;  %v565_v20 = vpop.permute.xlu1 %564 }
  0xa6   : > { %967 = vmatmul.mubr.msk.f32.gmra.mrb[2].mxu0 %vm417_vm0, %v406_v47 }
  0xa7   : > { %506 = vmatprep.mubr.f32.mxu0 %v1048_v11 }
  0xa9   : > { %v699_v35 = vpop.permute.xlu0 %698  ;;  %v704_v36 = vpop.permute.xlu1 %703 }
  0xaa   : > { %968 = vmatmul.mubr.msk.f32.gmra.mrb[4].mxu0 %vm417_vm0, %v407_v48 }
  0xab   : > { %512 = vmatprep.mubr.f32.mxu0 %v1048_v11 }
  0xad   : > { %v727_v37 = vpop.permute.xlu0 %726  ;;  %v709_v41 = vpop.permute.xlu1 %708 }
  0xae   : > { %969 = vmatmul.mubr.msk.f32.gmra.mrb[6].mxu0 %vm417_vm0, %v408_v49 }
  0xb1   : > { %v732_v44 = vpop.permute.xlu0 %731 }
 0x175   : > { %v496_v53 = vpop.f32.mrb[0].mxu0 }
 0x176   : > { %v539_v54 = vmul.f32 %v522_v50, %v496_v53  ;;  %v498_v55 = vpop.f32.mrb[1].mxu0 }
 0x177   : > { %v540_v57 = vmul.f32 %v522_v50, %v498_v55 }
 0x178   : > { %v567_v59 = vadd.f32 %v550_v52, %v539_v54 }
 0x179   : > { %v502_v58 = vpop.f32.mrb[2].mxu0  ;;  %v568_v0 = vadd.f32 %v550_v52, %v540_v57  ;;  %v714_v52 = vpop.permute.xlu1 %713 }
 0x17a   : > { %v541_v60 = vmul.f32 %v527_v51, %v502_v58  ;;  %v504_v61 = vpop.f32.mrb[3].mxu0  ;;  %v575_v5 = vmax.f32 %v567_v59, 0.0  ;;  %v737_v58 = vpop.permute.xlu0 %736 }
 0x17b   : > { %v542_v63 = vmul.f32 %v527_v51, %v504_v61  ;;  %v576_v10 = vmax.f32 %v568_v0, 0.0 }
 0x17c   : > { %v569_v1 = vadd.f32 %v555_v56, %v541_v60 }
 0x17d   : > { %v508_v3 = vpop.f32.mrb[4].mxu0  ;;  %v570_v4 = vadd.f32 %v555_v56, %v542_v63 }
 0x17e   : > { %v577_v6 = vmax.f32 %v569_v1, 0.0  ;;  %v543_v7 = vmul.f32 %v532_v62, %v508_v3  ;;  %v510_v8 = vpop.f32.mrb[5].mxu0  ;;  %v742_v3 = vpop.permute.xlu1 %741 }
 0x17f   : > { %v544_v9 = vmul.f32 %v532_v62, %v510_v8  ;;  %v578_v12 = vmax.f32 %v570_v4, 0.0 }
 0x180   : > { %v989_v13 = vpack.c.bf16 %v577_v6, %v575_v5  ;;  %v571_v17 = vadd.f32 %v560_v14, %v543_v7 }
 0x181   : > { %v514_v15 = vpop.f32.mrb[6].mxu0  ;;  %v987_v16 = vpack.c.bf16 %v578_v12, %v576_v10  ;;  %v572_v21 = vadd.f32 %v560_v14, %v544_v9 }
 0x182   : > { %v545_v18 = vmul.f32 %v537_v2, %v514_v15  ;;  %v516_v19 = vpop.f32.mrb[7].mxu0  ;;  %v579_v25 = vmax.f32 %v571_v17, 0.0 }
 0x183   : > { %v546_v22 = vmul.f32 %v537_v2, %v516_v19  ;;  %988 = vmatprep.subr.bf16.mxu1 %v987_v16  ;;  %v580_v27 = vmax.f32 %v572_v21, 0.0 }
 0x184   : > { %v573_v23 = vadd.f32 %v565_v20, %v545_v18  ;;  %990 = vmatpush1.bf16.msra.mxu1 %v989_v13 }
 0x185   : > { %v574_v24 = vadd.f32 %v565_v20, %v546_v22 }
 0x186   : > { %v581_v26 = vmax.f32 %v573_v23, 0.0 }
 0x187   : > { %v582_v28 = vmax.f32 %v574_v24, 0.0 }
 0x188   : > { %v993_v29 = vpack.c.bf16 %v581_v26, %v579_v25 }
 0x189   : > { %v991_v30 = vpack.c.bf16 %v582_v28, %v580_v27 }
 0x18b   : > { %992 = vmatprep.subr.bf16.mxu1 %v991_v30 }
 0x18c   : > { %994 = vmatpush1.bf16.msra.mxu1 %v993_v29 }
 0x18f   : > { %970 = vmatmul.mubr.msk.f32.vlgmr.msra.gmra.mrb[0].mxu1 %vm417_vm0, %v583_v31 }
 0x190   : > { %677 = vmatprep.mubr.f32.mxu1 %v1048_v11 }
 0x193   : > { %971 = vmatmul.mubr.msk.f32.gmra.mrb[2].mxu1 %vm417_vm0, %v584_v32 }
 0x194   : > { %683 = vmatprep.mubr.f32.mxu1 %v1048_v11 }
 0x197   : > { %972 = vmatmul.mubr.msk.f32.gmra.mrb[4].mxu1 %vm417_vm0, %v585_v33 }
 0x198   : > { %689 = vmatprep.mubr.f32.mxu1 %v1048_v11 }
 0x19b   : > { %973 = vmatmul.mubr.msk.f32.gmra.mrb[6].mxu1 %vm417_vm0, %v586_v34 }
 0x262   : > { %v673_v38 = vpop.f32.mrb[0].mxu1 }
 0x263   : > { %v716_v39 = vmul.f32 %v699_v35, %v673_v38  ;;  %v675_v40 = vpop.f32.mrb[1].mxu1 }
 0x264   : > { %v717_v42 = vmul.f32 %v699_v35, %v675_v40 }
 0x265   : > { %v744_v43 = vadd.f32 %v727_v37, %v716_v39 }
 0x266   : > { %v745_v45 = vadd.f32 %v727_v37, %v717_v42  ;;  %v679_v46 = vpop.f32.mrb[2].mxu1 }
 0x267   : > { %v752_v47 = vmax.f32 %v744_v43, 0.0  ;;  %v718_v11 = vmul.f32 %v704_v36, %v679_v46  ;;  %v681_v48 = vpop.f32.mrb[3].mxu1 }
 0x268   : > { %v753_v49 = vmax.f32 %v745_v45, 0.0  ;;  %v719_v50 = vmul.f32 %v704_v36, %v681_v48 }
 0x269   : > { %v746_v51 = vadd.f32 %v732_v44, %v718_v11  ;;  %760 = vxpose.xlu0.b32.start [1/4] (short) %v752_v47, 128 }
 0x26a   : > { %v747_v53 = vadd.f32 %v732_v44, %v719_v50  ;;  %792 = vxpose.xlu1.b32.start [1/4] (short) %v753_v49, 128  ;;  %v685_v54 = vpop.f32.mrb[4].mxu1 }
 0x26b   : > { %v754_v55 = vmax.f32 %v746_v51, 0.0  ;;  %v720_v56 = vmul.f32 %v709_v41, %v685_v54  ;;  %v687_v57 = vpop.f32.mrb[5].mxu1 }
 0x26c   : > { %v755_v59 = vmax.f32 %v747_v53, 0.0  ;;  %v721_v60 = vmul.f32 %v709_v41, %v687_v57 }
 0x26d   : > { %v748_v61 = vadd.f32 %v737_v58, %v720_v56  ;;  %761 = vxpose.xlu0.b32.cont [2/4] (short) %v754_v55, 128 }
 0x26e   : > { %v749_v62 = vadd.f32 %v737_v58, %v721_v60  ;;  %793 = vxpose.xlu1.b32.cont [2/4] (short) %v755_v59, 128  ;;  %v691_v63 = vpop.f32.mrb[6].mxu1 }
 0x26f   : > { %v756_v0 = vmax.f32 %v748_v61, 0.0  ;;  %v722_v1 = vmul.f32 %v714_v52, %v691_v63  ;;  %v693_v2 = vpop.f32.mrb[7].mxu1 }
 0x270   : > { %v757_v4 = vmax.f32 %v749_v62, 0.0  ;;  %v723_v5 = vmul.f32 %v714_v52, %v693_v2 }
 0x271   : > { %v750_v6 = vadd.f32 %v742_v3, %v722_v1  ;;  %762 = vxpose.xlu0.b32.cont [3/4] (short) %v756_v0, 128 }
 0x272   : > { %v751_v7 = vadd.f32 %v742_v3, %v723_v5  ;;  %794 = vxpose.xlu1.b32.cont [3/4] (short) %v757_v4, 128 }
 0x273   : > { %v758_v8 = vmax.f32 %v750_v6, 0.0 }
 0x274   : > { %v759_v9 = vmax.f32 %v751_v7, 0.0 }
 0x275   : > { %763 = vxpose.xlu0.b32.end [4/4] (short) %v758_v8, 128 }
 0x276   : > { %795 = vxpose.xlu1.b32.end [4/4] (short) %v759_v9, 128 }
 0x2e9   : > { %v776_v10 = vpop.trf.xlu0 }
 0x2ea   : > { %824 = vst.msk [vmem:[%s1214_s14] sm:$0xff] %vm417_vm0, %v776_v10  ;;  %v808_v12 = vpop.trf.xlu1 }
 0x2eb   : > { %840 = vst.msk [vmem:[%s1214_s14 + $0x80] sm:$0xff] %vm417_vm0, %v808_v12 }
 0x2ed   : > { %v777_v13 = vpop.trf.xlu0 }
 0x2ee   : > { %825 = vst.msk [vmem:[%s1214_s14 + $0x8] sm:$0xff] %vm417_vm0, %v777_v13  ;;  %v809_v14 = vpop.trf.xlu1 }
 0x2ef   : > { %841 = vst.msk [vmem:[%s1214_s14 + $0x88] sm:$0xff] %vm417_vm0, %v809_v14 }
 0x2f1   : > { %v778_v15 = vpop.trf.xlu0 }
 0x2f2   : > { %826 = vst.msk [vmem:[%s1214_s14 + $0x10] sm:$0xff] %vm417_vm0, %v778_v15  ;;  %v810_v16 = vpop.trf.xlu1 }
 0x2f3   : > { %842 = vst.msk [vmem:[%s1214_s14 + $0x90] sm:$0xff] %vm417_vm0, %v810_v16 }
 0x2f5   : > { %v779_v17 = vpop.trf.xlu0 }
 0x2f6   : > { %827 = vst.msk [vmem:[%s1214_s14 + $0x18] sm:$0xff] %vm417_vm0, %v779_v17  ;;  %v811_v18 = vpop.trf.xlu1 }
 0x2f7   : > { %843 = vst.msk [vmem:[%s1214_s14 + $0x98] sm:$0xff] %vm417_vm0, %v811_v18 }
 0x2f9   : > { %v780_v19 = vpop.trf.xlu0 }
 0x2fa   : > { %828 = vst.msk [vmem:[%s1214_s14 + $0x20] sm:$0xff] %vm417_vm0, %v780_v19  ;;  %v812_v20 = vpop.trf.xlu1 }
 0x2fb   : > { %844 = vst.msk [vmem:[%s1214_s14 + $0xa0] sm:$0xff] %vm417_vm0, %v812_v20 }
 0x2fd   : > { %v781_v21 = vpop.trf.xlu0 }
 0x2fe   : > { %829 = vst.msk [vmem:[%s1214_s14 + $0x28] sm:$0xff] %vm417_vm0, %v781_v21  ;;  %v813_v22 = vpop.trf.xlu1 }
 0x2ff   : > { %845 = vst.msk [vmem:[%s1214_s14 + $0xa8] sm:$0xff] %vm417_vm0, %v813_v22 }
 0x301   : > { %v782_v23 = vpop.trf.xlu0 }
 0x302   : > { %830 = vst.msk [vmem:[%s1214_s14 + $0x30] sm:$0xff] %vm417_vm0, %v782_v23  ;;  %v814_v24 = vpop.trf.xlu1 }
 0x303   : > { %846 = vst.msk [vmem:[%s1214_s14 + $0xb0] sm:$0xff] %vm417_vm0, %v814_v24 }
 0x305   : > { %v783_v25 = vpop.trf.xlu0 }
 0x306   : > { %831 = vst.msk [vmem:[%s1214_s14 + $0x38] sm:$0xff] %vm417_vm0, %v783_v25  ;;  %v815_v26 = vpop.trf.xlu1 }
 0x307   : > { %847 = vst.msk [vmem:[%s1214_s14 + $0xb8] sm:$0xff] %vm417_vm0, %v815_v26 }
 0x309   : > { %v784_v27 = vpop.trf.xlu0 }
 0x30a   : > { %832 = vst.msk [vmem:[%s1214_s14 + $0x40] sm:$0xff] %vm417_vm0, %v784_v27  ;;  %v816_v28 = vpop.trf.xlu1 }
 0x30b   : > { %848 = vst.msk [vmem:[%s1214_s14 + $0xc0] sm:$0xff] %vm417_vm0, %v816_v28 }
 0x30d   : > { %v785_v29 = vpop.trf.xlu0 }
 0x30e   : > { %833 = vst.msk [vmem:[%s1214_s14 + $0x48] sm:$0xff] %vm417_vm0, %v785_v29  ;;  %v817_v30 = vpop.trf.xlu1 }
 0x30f   : > { %849 = vst.msk [vmem:[%s1214_s14 + $0xc8] sm:$0xff] %vm417_vm0, %v817_v30 }
 0x311   : > { %v786_v31 = vpop.trf.xlu0 }
 0x312   : > { %834 = vst.msk [vmem:[%s1214_s14 + $0x50] sm:$0xff] %vm417_vm0, %v786_v31  ;;  %v818_v32 = vpop.trf.xlu1 }
 0x313   : > { %850 = vst.msk [vmem:[%s1214_s14 + $0xd0] sm:$0xff] %vm417_vm0, %v818_v32 }
 0x315   : > { %v787_v33 = vpop.trf.xlu0 }
 0x316   : > { %835 = vst.msk [vmem:[%s1214_s14 + $0x58] sm:$0xff] %vm417_vm0, %v787_v33  ;;  %v819_v34 = vpop.trf.xlu1 }
 0x317   : > { %851 = vst.msk [vmem:[%s1214_s14 + $0xd8] sm:$0xff] %vm417_vm0, %v819_v34 }
 0x319   : > { %v788_v35 = vpop.trf.xlu0 }
 0x31a   : > { %836 = vst.msk [vmem:[%s1214_s14 + $0x60] sm:$0xff] %vm417_vm0, %v788_v35  ;;  %v820_v36 = vpop.trf.xlu1 }
 0x31b   : > { %852 = vst.msk [vmem:[%s1214_s14 + $0xe0] sm:$0xff] %vm417_vm0, %v820_v36 }
 0x31d   : > { %v789_v37 = vpop.trf.xlu0 }
 0x31e   : > { %837 = vst.msk [vmem:[%s1214_s14 + $0x68] sm:$0xff] %vm417_vm0, %v789_v37  ;;  %v821_v38 = vpop.trf.xlu1 }
 0x31f   : > { %853 = vst.msk [vmem:[%s1214_s14 + $0xe8] sm:$0xff] %vm417_vm0, %v821_v38 }
 0x321   : > { %v790_v39 = vpop.trf.xlu0 }
 0x322   : > { %838 = vst.msk [vmem:[%s1214_s14 + $0x70] sm:$0xff] %vm417_vm0, %v790_v39  ;;  %v822_v40 = vpop.trf.xlu1 }
 0x323   : > { %854 = vst.msk [vmem:[%s1214_s14 + $0xf0] sm:$0xff] %vm417_vm0, %v822_v40 }
 0x325   : > { %v791_v41 = vpop.trf.xlu0 }
 0x326   : > { %839 = vst.msk [vmem:[%s1214_s14 + $0x78] sm:$0xff] %vm417_vm0, %v791_v41  ;;  %v823_v42 = vpop.trf.xlu1 }
 0x327   : > { %855 = vst.msk [vmem:[%s1214_s14 + $0xf8] sm:$0xff] %vm417_vm0, %v823_v42 }
 0x328 PF: > { %s18_s29 = sadd.s32 1, %s1045_s29   ;;  %s1298_s27 = smov %s1041_s28 }
 0x329   : > { %p15_p5 = scmp.ge.s32.totalorder %s18_s29, 4   ;;  %s1299_s28 = smov %s1301_s30 }
 0x32b   :  { %17 = sbr.rel (!%p15_p5) target bundleno = 2 (0x2), region = 85 }

</bundles_post_ra>
